<compile_context>
chip_gen: v7x
topology: tpu7x:2x2x1
jax: 0.10.0
libtpu: 0.0.40
codegen_flags: <defaults>
</compile_context>

<pallas_src>
import random

import jax
import jax.numpy as jnp
import numpy as np
from jax.experimental import pallas as pl
from jax.experimental.pallas import tpu as pltpu

_SUBLANE = 16   # sublane alignment that is tile-native for both f32 and bf16 blocks
_LANE = 128


def _round_up(x: int, m: int) -> int:
    return ((x + m - 1) // m) * m


def _plan_tiles(n, e, d, tm, tk, td):
    """Clip requested tiles to the (padded) problem and keep >=2 parallel blocks."""
    tm = min(tm, _round_up(n, _SUBLANE))
    tk = min(tk, _round_up(e, _LANE))
    td = min(td, _round_up(d, _LANE))
    # v7x megacore: the two "parallel" grid axes (i over N, j over D) should expose
    # at least 2 blocks so both TensorCores get work.  Harmless on v5e/v6e (1 TC).
    if (_round_up(n, tm) // tm) * (_round_up(d, td) // td) < 2:
        if n >= 2 * _SUBLANE:
            tm = _round_up((n + 1) // 2, _SUBLANE)
        elif d >= 2 * _LANE:
            td = _round_up((d + 1) // 2, _LANE)
    n_p = _round_up(n, tm)
    e_p = _round_up(e, tk)
    d_p = _round_up(d, td)
    return tm, tk, td, n_p, e_p, d_p


def _vmem_limit_bytes(tm, tk, td, mask_isz, emb_isz, out_isz):
    used = (
        2 * tm * tk * mask_isz      # mask tile, double buffered
        + 2 * tk * td * emb_isz     # edge-feature tile, double buffered
        + 2 * tm * td * out_isz     # output tile, double buffered
        + 2 * tm * _LANE * 4        # (tm, 1) inv column lane-pads to (tm, 128) f32
        + tm * td * 4               # f32 accumulator scratch
    )
    return int(used + (4 << 20))    # headroom for Mosaic internals


# ----------------------------------------------------------------------------
# Pallas kernel: tiled (mask @ emb), row-scaled by 1/num_neigh on the last k-step
# ----------------------------------------------------------------------------
def _mean_agg_kernel(mask_ref, emb_ref, inv_ref, out_ref, acc_ref):
    k = pl.program_id(2)

    @pl.when(k == 0)
    def _():
        acc_ref[...] = jnp.zeros_like(acc_ref)

    acc_ref[...] += jnp.dot(
        mask_ref[...], emb_ref[...], preferred_element_type=jnp.float32
    )

    @pl.when(k == pl.num_programs(2) - 1)
    def _():
        # inv_ref is [TM, 1] f32; broadcast-scale the tile (NaN for 0-neigh rows).
        out_ref[...] = (acc_ref[...] * inv_ref[...]).astype(out_ref.dtype)


def mean_aggregate(
    mask,
    embed_matrix,
    inv_num_neigh,
    *,
    tm=512,
    tk=2048,
    td=1024,
    compute_dtype=jnp.bfloat16,
    out_dtype=jnp.float32,
    out_rows=None,
    out_cols=None,
):
    """mask: [N, E] 0/1; embed_matrix: [E, D]; inv_num_neigh: [N] or [N,1] -> [rows, cols]."""
    n, e = mask.shape
    e2, d = embed_matrix.shape
    assert e == e2, (e, e2)
    out_rows = n if out_rows is None else out_rows
    out_cols = d if out_cols is None else out_cols

    tm, tk, td, n_p, e_p, d_p = _plan_tiles(n, e, d, tm, tk, td)

    mask = mask.astype(compute_dtype)
    emb = embed_matrix.astype(compute_dtype)
    inv = inv_num_neigh.astype(jnp.float32).reshape(-1, 1)

    # Pad only if the caller did not already hand us aligned arrays (the host glue
    # below builds the big mask pre-padded, so no device-side copy happens there).
    if mask.shape != (n_p, e_p):
        mask = jnp.pad(mask, ((0, n_p - n), (0, e_p - e)))
    if emb.shape != (e_p, d_p):
        emb = jnp.pad(emb, ((0, e_p - e), (0, d_p - d)))
    if inv.shape[0] != n_p:
        inv = jnp.pad(inv, ((0, n_p - inv.shape[0]), (0, 0)))

    grid = (n_p // tm, d_p // td, e_p // tk)
    vmem_limit = _vmem_limit_bytes(
        tm, tk, td,
        jnp.dtype(compute_dtype).itemsize,
        jnp.dtype(compute_dtype).itemsize,
        jnp.dtype(out_dtype).itemsize,
    )

    out_p = pl.pallas_call(
        _mean_agg_kernel,
        out_shape=jax.ShapeDtypeStruct((n_p, d_p), out_dtype),
        grid=grid,
        in_specs=[
            pl.BlockSpec((tm, tk), lambda i, j, k: (i, k)),   # mask tile
            pl.BlockSpec((tk, td), lambda i, j, k: (k, j)),   # edge-feature tile
            pl.BlockSpec((tm, 1), lambda i, j, k: (i, 0)),    # 1/num_neigh column
        ],
        out_specs=pl.BlockSpec((tm, td), lambda i, j, k: (i, j)),
        scratch_shapes=[pltpu.VMEM((tm, td), jnp.float32)],
        compiler_params=pltpu.CompilerParams(
            dimension_semantics=("parallel", "parallel", "arbitrary"),
            vmem_limit_bytes=vmem_limit,
        ),
    )(mask, emb, inv)

    return out_p[:out_rows, :out_cols]


# ----------------------------------------------------------------------------
# Host-side glue replicating MeanAggregator.forward's bookkeeping (rwr=False)
# ----------------------------------------------------------------------------
def mean_aggregator_forward(
    nodes, to_neighs, edge_feature_table, num_sample=None, gcn=False,
    tm=512, tk=2048, td=1024,
):
    if num_sample is not None:
        rng = random.Random(0)  # deterministic stand-in for random.sample
        samp_neighs = [
            set(rng.sample(sorted(to_neigh), num_sample))
            if len(to_neigh) >= num_sample else set(to_neigh)
            for to_neigh in to_neighs
        ]
    else:
        samp_neighs = [set(t) for t in to_neighs]

    if gcn:
        samp_neighs = [sn | {nodes[i]} for i, sn in enumerate(samp_neighs)]

    unique_edges_list = sorted(set.union(*samp_neighs))
    unique_edges = {e: i for i, e in enumerate(unique_edges_list)}

    n = len(samp_neighs)
    e_u = len(unique_edges_list)
    d = int(edge_feature_table.shape[1])

    tm, tk, td, n_p, e_p, d_p = _plan_tiles(n, e_u, d, tm, tk, td)

    # Build the mask already padded and already bf16 on the host: no device-side
    # jnp.pad copy of the largest tensor, and half the host->device transfer bytes.
    mask_np = np.zeros((n_p, e_p), dtype=jnp.bfloat16)
    for i, sn in enumerate(samp_neighs):
        for ed in sn:
            mask_np[i, unique_edges[ed]] = 1.0

    # Host-computed, padded 1/num_neigh (inf for isolated nodes -> NaN rows, as in torch).
    counts = np.asarray([len(sn) for sn in samp_neighs], dtype=np.float32)
    inv_np = np.zeros((n_p, 1), dtype=np.float32)
    with np.errstate(divide="ignore"):
        inv_np[:n, 0] = 1.0 / counts

    # Pad the gather indices (repeat edge id 0) so the gathered embed_matrix already
    # has e_p rows; the padded mask columns are zero so those rows contribute nothing.
    idx = np.zeros((e_p,), dtype=np.int32)
    idx[:e_u] = np.asarray(unique_edges_list, dtype=np.int32)
    embed_matrix = edge_feature_table[jnp.asarray(idx)]   # [e_p, d]

    return mean_aggregate(
        jnp.asarray(mask_np), embed_matrix, jnp.asarray(inv_np),
        tm=tm, tk=tk, td=td, out_rows=n, out_cols=d,
    )


# ----------------------------------------------------------------------------
# Pure-JAX reference (mirrors torch: normalize mask first, then matmul), in f32
# ----------------------------------------------------------------------------
def _ref(mask, embed_matrix):
    num_neigh = mask.sum(axis=1, keepdims=True)
    return (mask / num_neigh) @ embed_matrix


if __name__ == "__main__":
    key = jax.random.PRNGKey(0)
    k_emb, k_mask, k_emb2 = jax.random.split(key, 3)

    # --- Test 1: module-shaped toy case through the full forward glue ------------
    num_nodes, num_total_edges, feat_dim = 8, 32, 32
    edge_feature_table = jax.random.normal(
        k_emb, (num_total_edges, feat_dim), dtype=jnp.float32
    )
    nodes = list(range(num_nodes))
    to_neighs = [
        {(3 * i + 1) % num_total_edges,
         (7 * i + 2) % num_total_edges,
         (11 * i + 5) % num_total_edges}
        for i in nodes
    ]
    out = jax.block_until_ready(
        mean_aggregator_forward(nodes, to_neighs, edge_feature_table,
                                num_sample=None, gcn=False)
    )

    uel = sorted(set.union(*[set(t) for t in to_neighs]))
    ue = {e: i for i, e in enumerate(uel)}
    mask_np = np.zeros((num_nodes, len(uel)), dtype=np.float32)
    for i, sn in enumerate(to_neighs):
        for ed in sn:
            mask_np[i, ue[ed]] = 1.0
    ref = _ref(jnp.asarray(mask_np),
               edge_feature_table[jnp.asarray(uel, jnp.int32)])
    # bf16 feature cast -> loosened tolerance (mask & f32 accumulation stay exact).
    np.testing.assert_allclose(np.asarray(out), np.asarray(ref),
                               rtol=2e-2, atol=2e-2)

    # --- Test 2: force a multi-step (i, j, k) grid to exercise the accumulator ---
    n2, e2, d2 = 40, 300, 200
    mask2 = jax.random.bernoulli(k_mask, p=0.1, shape=(n2, e2)).astype(jnp.float32)
    mask2 = mask2.at[:, 0].set(1.0)            # guarantee >= 1 neighbor per row
    emb2 = jax.random.normal(k_emb2, (e2, d2), dtype=jnp.float32)
    counts2 = mask2.sum(axis=1)
    out2 = jax.block_until_ready(
        mean_aggregate(mask2, emb2, 1.0 / counts2, tm=16, tk=128, td=128)
    )
    ref2 = _ref(mask2, emb2)
    np.testing.assert_allclose(np.asarray(out2), np.asarray(ref2),
                               rtol=2e-2, atol=2e-2)

    print("KERNEL_OK")
</pallas_src>

<mosaic_0001>
module attributes {stable_mosaic.version = 11 : i64} {
  func.func @_mean_agg_kernel(%arg0: i32, %arg1: i32, %arg2: i32, %arg3: memref<16x128xbf16, #tpu.memory_space<vmem>>, %arg4: memref<128x128xbf16, #tpu.memory_space<vmem>>, %arg5: memref<16x1xf32, #tpu.memory_space<vmem>>, %arg6: memref<16x128xf32, #tpu.memory_space<vmem>>, %arg7: memref<16x128xf32, #tpu.memory_space<vmem>>) attributes {dimension_semantics = [#tpu.dimension_semantics<parallel>, #tpu.dimension_semantics<parallel>, #tpu.dimension_semantics<arbitrary>], iteration_bounds = array<i64: 1, 1, 1>, scalar_prefetch = 0 : i64, scratch_operands = 1 : i64, tpu.core_type = #tpu.core_type<tc>, window_params = [{transform_indices = @transform_0, window_bounds = array<i64: 16, 128>}, {transform_indices = @transform_1, window_bounds = array<i64: 128, 128>}, {transform_indices = @transform_2, window_bounds = array<i64: 16, 1>}, {transform_indices = @transform_3, window_bounds = array<i64: 16, 128>}]} {
    %c0_i32 = arith.constant 0 : i32
    %0 = arith.cmpi eq, %arg2, %c0_i32 : i32
    %1 = arith.extui %0 : i1 to i32
    %c0_i32_0 = arith.constant 0 : i32
    %2 = arith.cmpi ne, %1, %c0_i32_0 : i32
    scf.if %2 {
      %cst_10 = arith.constant 0.000000e+00 : f32
      %12 = vector.broadcast %cst_10 : f32 to vector<16x128xf32>
      %c0_11 = arith.constant 0 : index
      %c0_12 = arith.constant 0 : index
      %13 = vector.load %arg7[%c0_11, %c0_12] : memref<16x128xf32, #tpu.memory_space<vmem>>, vector<16x128xf32>
      tpu.vector_store %arg7[%c0_11, %c0_12], %12 {strides = array<i32>} : memref<16x128xf32, #tpu.memory_space<vmem>>, vector<16x128xf32>,
    } else {
    }
    %c0 = arith.constant 0 : index
    %c0_1 = arith.constant 0 : index
    %3 = vector.load %arg7[%c0, %c0_1] : memref<16x128xf32, #tpu.memory_space<vmem>>, vector<16x128xf32>
    %c0_2 = arith.constant 0 : index
    %c0_3 = arith.constant 0 : index
    %4 = vector.load %arg3[%c0_2, %c0_3] : memref<16x128xbf16, #tpu.memory_space<vmem>>, vector<16x128xbf16>
    %c0_4 = arith.constant 0 : index
    %c0_5 = arith.constant 0 : index
    %5 = vector.load %arg4[%c0_4, %c0_5] : memref<128x128xbf16, #tpu.memory_space<vmem>>, vector<128x128xbf16>
    %cst = arith.constant dense<0.000000e+00> : vector<16x128xf32>
    %6 = tpu.matmul %4, %5, %cst {dimension_numbers = #tpu.dot_dimension_numbers<[1], [0], [0], [1], [0, 0, 1, 1], [], []>} : vector<16x128xbf16>, vector<128x128xbf16>, vector<16x128xf32> -> vector<16x128xf32>
    %7 = arith.addf %3, %6 : vector<16x128xf32>
    %c0_6 = arith.constant 0 : index
    %c0_7 = arith.constant 0 : index
    %8 = vector.load %arg7[%c0_6, %c0_7] : memref<16x128xf32, #tpu.memory_space<vmem>>, vector<16x128xf32>
    tpu.vector_store %arg7[%c0_6, %c0_7], %7 {strides = array<i32>} : memref<16x128xf32, #tpu.memory_space<vmem>>, vector<16x128xf32>,
    %c0_i32_8 = arith.constant 0 : i32
    %9 = arith.cmpi eq, %arg2, %c0_i32_8 : i32
    %10 = arith.extui %9 : i1 to i32
    %c0_i32_9 = arith.constant 0 : i32
    %11 = arith.cmpi ne, %10, %c0_i32_9 : i32
    scf.if %11 {
      %c0_10 = arith.constant 0 : index
      %c0_11 = arith.constant 0 : index
      %12 = vector.load %arg7[%c0_10, %c0_11] : memref<16x128xf32, #tpu.memory_space<vmem>>, vector<16x128xf32>
      %c0_12 = arith.constant 0 : index
      %c0_13 = arith.constant 0 : index
      %13 = vector.load %arg5[%c0_12, %c0_13] : memref<16x1xf32, #tpu.memory_space<vmem>>, vector<16x1xf32>
      %14 = vector.broadcast %13 : vector<16x1xf32> to vector<16x128xf32>
      %15 = arith.mulf %12, %14 : vector<16x128xf32>
      %c0_14 = arith.constant 0 : index
      %c0_15 = arith.constant 0 : index
      %16 = vector.load %arg6[%c0_14, %c0_15] : memref<16x128xf32, #tpu.memory_space<vmem>>, vector<16x128xf32>
      tpu.vector_store %arg6[%c0_14, %c0_15], %15 {strides = array<i32>} : memref<16x128xf32, #tpu.memory_space<vmem>>, vector<16x128xf32>,
    } else {
    }
    return
  }
  func.func @transform_0(%arg0: i32, %arg1: i32, %arg2: i32) -> (i32, i32) {
    %c0_i32 = arith.constant 0 : i32
    return %arg0, %arg2 : i32, i32
  }
  func.func @transform_1(%arg0: i32, %arg1: i32, %arg2: i32) -> (i32, i32) {
    %c0_i32 = arith.constant 0 : i32
    return %arg2, %arg1 : i32, i32
  }
  func.func @transform_2(%arg0: i32, %arg1: i32, %arg2: i32) -> (i32, i32) {
    %c0_i32 = arith.constant 0 : i32
    %c0_i32_0 = arith.constant 0 : i32
    return %arg0, %c0_i32 : i32, i32
  }
  func.func @transform_3(%arg0: i32, %arg1: i32, %arg2: i32) -> (i32, i32) {
    %c0_i32 = arith.constant 0 : i32
    return %arg0, %arg1 : i32, i32
  }
}

</mosaic_0001>

<bundles_post_ra>
// kernel: tpu_custom_call.1
= control target key start
LH: loop header
LB: loop body
LE: loop exit
PB: predicated region body
PF: predicated region fallthrough
CT: control target
= control target key end

     0   :  { %8 = vsyncpa [#allocation4], 0  ;;  %s360_s0 = inlined_call_operand.vmem [shape: bf16[16,128], index: 0, kind: input, shape index: {}]   ;;  %s361_s1 = inlined_call_operand.hbm [shape: bf16[128,128], index: 1, kind: input, shape index: {}]   ;;  %s362_s2 = inlined_call_operand.vmem [shape: f32[16,1], index: 2, kind: input, shape index: {}]   ;;  %s363_s3 = inlined_call_operand.hbm [shape: f32[16,128], index: 3, kind: output, shape index: {}]  }
   0x1   :  { %9 = vsyncpa [#allocation5], 0  ;;  %s298_s12 = smov [#allocation3]   ;;  %s250_s16 = scalar_lea.hbm %s361_s1, 1024 }
   0x2   :  { %s17_s13 = sshll.u32 %s298_s12, 4  ;;  %p251_p0 = scmp.ne.s32.totalorder %s361_s1, %s250_s16  ;;  %s18_s13 = int_to_ptr.vmem [resolvable:$true] %s17_s13 }
   0x3   :  { %p254_p1 = scmp.lt.u32.totalorder %s250_s16, %s361_s1 }
   0x5   :  { %p256_p2 = pnand %p254_p1, %p251_p0 }
   0x7   :  { %259 = shalt.err (!%p256_p2)
}
   0x8   :  { %s260_s21 = scalar_lea.vmem %s18_s13, 1024  ;;  %p265_p4 = scmp.lt.s32.totalorder %s18_s13, %s18_s13 }
   0x9   :  { %p261_p3 = scmp.ne.s32.totalorder %s18_s13, %s260_s21  ;;  %p266_p5 = scmp.lt.s32.totalorder %s260_s21, %s260_s21 }
   0xb   :  { %p267_p6 = por %p266_p5, %p265_p4 }
   0xd   :  { %p268_p7 = pnand %p267_p6, %p261_p3 }
   0xf   :  { %271 = shalt.err (!%p268_p7)
}
  0x10   :  { %s299_s22 = smov 64   ;;  %s300_s23 = smov 4  }
  0x11   :  { %23 = dma.hbm_to_vmem [thread:$0]  %s361_s1, 1024, %s18_s13, [#allocation4], %s299_s22, %s299_s22, %s300_s23  }
  0x12   :  { %294 = dma.done.wait [#allocation4], 1024  }
  0x13   :  { %295 = vsyncadd [#allocation4], 4294966272  ;;  %v301_v0 = vmov 0.0   ;;  %vm302_vm0 = vmmov 0   ;;  %v303_v1 = vmov 0   ;;  %v241_v2 = vld [vmem:[#allocation3] sm:$0xff]  }
  0x14   :  { %211 = vmatprep.subr.bf16.mxu0 %v301_v0  ;;  %227 = vmatprep.mubr.msk.bf16.mxu0 %vm302_vm0, %v301_v0  ;;  %v242_v3 = vld [vmem:[#allocation3 + $0x8] sm:$0xff]   ;;  %v243_v4 = vld [vmem:[#allocation3 + $0x10] sm:$0xff]   ;;  %v160_v5 = vld [vmem:[%s362_s2] sm:$0xff] }
  0x15   :  { %240 = vset.pattern.permute.xlu0 %v303_v1  ;;  %212 = vmatpush3.bf16.msra.mxu0 %v241_v2  ;;  %v244_v6 = vld [vmem:[#allocation3 + $0x18] sm:$0xff]   ;;  %v161_v7 = vld [vmem:[%s362_s2 + $0x8] sm:$0xff]  ;;  %v245_v8 = vld [vmem:[#allocation3 + $0x20] sm:$0xff]   ;;  %s304_s2 = smov [#allocation6]  }
  0x16   :  { %213 = vmatprep.subr.bf16.mxu0 %v301_v0  ;;  %164 = vperm.xlu0 %240, %v160_v5   ;;  %v246_v9 = vld [vmem:[#allocation3 + $0x28] sm:$0xff]   ;;  %v247_v10 = vld [vmem:[#allocation3 + $0x30] sm:$0xff]   ;;  %v248_v11 = vld [vmem:[#allocation3 + $0x38] sm:$0xff]   ;;  %s181_s4 = sshll.u32 %s304_s2, 4  ;;  %s182_s4 = int_to_ptr.vmem [resolvable:$true] %s181_s4 }
  0x17   :  { %v249_v12 = vld [vmem:[%s360_s0] sm:$0xff]   ;;  %s272_s5 = scalar_lea.vmem %s182_s4, 256  ;;  %p277_p9 = scmp.lt.s32.totalorder %s182_s4, %s182_s4 }
  0x18   :  { %p273_p8 = scmp.ne.s32.totalorder %s182_s4, %s272_s5  ;;  %p278_p10 = scmp.lt.s32.totalorder %s272_s5, %s272_s5 }
  0x19   :  { %214 = vmatpush3.bf16.msra.mxu0 %v242_v3 }
  0x1a   :  { %215 = vmatprep.subr.bf16.mxu0 %v301_v0  ;;  %169 = vperm.xlu0 %240, %v161_v7   ;;  %p279_p11 = por %p278_p10, %p277_p9 }
  0x1c   :  { %p280_p12 = pnand %p279_p11, %p273_p8 }
  0x1d   :  { %216 = vmatpush3.bf16.msra.mxu0 %v243_v4 }
  0x1e   :  { %217 = vmatprep.subr.bf16.mxu0 %v301_v0 }
  0x21   :  { %218 = vmatpush3.bf16.msra.mxu0 %v244_v6 }
  0x22   :  { %219 = vmatprep.subr.bf16.mxu0 %v301_v0 }
  0x25   :  { %220 = vmatpush3.bf16.msra.mxu0 %v245_v8 }
  0x26   :  { %221 = vmatprep.subr.bf16.mxu0 %v301_v0 }
  0x29   :  { %222 = vmatpush3.bf16.msra.mxu0 %v246_v9 }
  0x2a   :  { %223 = vmatprep.subr.bf16.mxu0 %v301_v0 }
  0x2d   :  { %224 = vmatpush3.bf16.msra.mxu0 %v247_v10 }
  0x2e   :  { %225 = vmatprep.subr.bf16.mxu0 %v301_v0 }
  0x31   :  { %226 = vmatpush3.bf16.msra.mxu0 %v248_v11 }
  0x34   :  { %228 = vmatmul.mubr.bf16.vlgmr.msra.gmra.mrb[0].mxu0 %v249_v12 }
  0x95   :  { %v165_v13 = vpop.permute.xlu0 %164 }
  0x99   :  { %v170_v17 = vpop.permute.xlu0 %169 }
 0x107   :  { %v144_v14 = vpop.f32.mrb[0].mxu0 }
 0x108   :  { %v172_v15 = vmul.f32 %v165_v13, %v144_v14  ;;  %v229_v16 = vpop.f32.mrb[1].mxu0 }
 0x109   :  { %v147_v18 = vpop.f32.mrb[2].mxu0 }
 0x10a   :  { %174 = vst [vmem:[#allocation6] sm:$0xff] %v172_v15  ;;  %v173_v19 = vmul.f32 %v170_v17, %v147_v18  ;;  %v230_v20 = vpop.f32.mrb[3].mxu0 }
 0x10c   :  { %175 = vst [vmem:[#allocation6 + $0x8] sm:$0xff] %v173_v19 }
 0x10d   :  { %283 = shalt.err (!%p280_p12)
}
 0x10e   :  { %s284_s7 = scalar_lea.hbm %s363_s3, 256 }
 0x10f   :  { %p285_p13 = scmp.ne.s32.totalorder %s363_s3, %s284_s7  ;;  %p288_p0 = scmp.lt.u32.totalorder %s284_s7, %s363_s3 }
 0x111   :  { %p290_p1 = pnand %p288_p0, %p285_p13 }
 0x113   :  { %293 = shalt.err (!%p290_p1)
}
 0x114   :  { %s305_s12 = smov 128   ;;  %s306_s13 = smov 8  }
 0x115   :  { %187 = dma.vmem_to_hbm [thread:$0]  %s182_s4, 256, %s363_s3, [#allocation5], %s305_s12, %s305_s12, %s306_s13  }
 0x116   :  { %296 = dma.done.wait [#allocation5], 256  }
 0x117   :  { %297 = vsyncadd [#allocation5], 4294967040 }
 0x118   :  { %191 = vsyncpa [#allocation4], 1 }
 0x119   :  { %192 = vsyncpa [#allocation5], 1 }

</bundles_post_ra>
